<compile_context>
chip_gen: v7x
topology: tpu7x:2x2x1
jax: 0.10.0
libtpu: 0.0.40
codegen_flags: <defaults>
</compile_context>

<pallas_src>
import jax
import jax.numpy as jnp
from jax.experimental import pallas as pl
from jax.experimental.pallas import tpu as pltpu


def attention2_kernel(zo_ref, zl_ref, zg_ref, ul_ref, ug_ref, cl_ref, cg_ref, out_ref):
    zo = zo_ref[...].astype(jnp.float32)                 # (T, C_in)
    u_l = ul_ref[...].astype(jnp.float32)                # (1, C_in)  = W^T @ colsum(Z_l)
    u_g = ug_ref[...].astype(jnp.float32)                # (1, C_in)  = W^T @ colsum(Z_g)
    c_l = cl_ref[...].astype(jnp.float32)                # (1, 1)     = b . colsum(Z_l)
    c_g = cg_ref[...].astype(jnp.float32)                # (1, 1)     = b . colsum(Z_g)

    # Per-row scores (VPU multiply + lane reduce; no MXU, no (T, C_out) intermediate).
    att_l = jnp.sum(zo * u_l, axis=1, keepdims=True) + c_l          # (T, 1) f32
    att_g = jnp.sum(zo * u_g, axis=1, keepdims=True) + c_g          # (T, 1) f32

    # Row-wise 2-way softmax, max-subtracted, EXACT division (the (T, 1) divide is
    # tiny; the approximate EUP reciprocal previously cost ~1e-3 relative error).
    m = jnp.maximum(att_l, att_g)
    e_l = jnp.exp(att_l - m)
    e_g = jnp.exp(att_g - m)
    denom = e_l + e_g
    a_l = e_l / denom
    a_g = e_g / denom

    # Blend in the streams' native dtype (bf16 stays bf16 on v6e/v7x: half the vregs
    # and VALU issue slots); output precision is set by out_ref.dtype anyway.
    zl = zl_ref[...]
    zg = zg_ref[...]
    out = zl * a_l.astype(zl.dtype) + zg * a_g.astype(zg.dtype)
    out_ref[...] = out.astype(out_ref.dtype)


def _round_up(x, m):
    return ((x + m - 1) // m) * m


def attention2(z_o, z_l, z_g, w, b, *, tile_n=None):
    """Pallas forward of Attention2. w: (C_out, C_in) [Linear weight], b: (C_out,)."""
    n, c_in = z_o.shape
    _, c_out = z_l.shape

    # --- XLA-side prep (done once, O(N*C_out + C_in*C_out)): fold Linear + colsums. ---
    f32 = jnp.float32
    s_l = jnp.sum(z_l.astype(f32), axis=0)               # (C_out,)  colsum(Z_l)
    s_g = jnp.sum(z_g.astype(f32), axis=0)               # (C_out,)  colsum(Z_g)
    w32 = w.astype(f32)                                  # (C_out, C_in)
    b32 = b.astype(f32)                                  # (C_out,)
    u_l = (s_l @ w32).reshape(1, c_in)                   # (1, C_in) = W^T @ s_l
    u_g = (s_g @ w32).reshape(1, c_in)                   # (1, C_in)
    c_l = jnp.dot(b32, s_l).reshape(1, 1)                # (1, 1)
    c_g = jnp.dot(b32, s_g).reshape(1, 1)                # (1, 1)

    # --- Tile selection: HBM-bound streaming. Size tiles against a conservative
    #     VMEM budget (fits v5e's 16 MiB scoped default; ample on v6e/v7x). ---
    itemsize = max(jnp.dtype(z_o.dtype).itemsize, jnp.dtype(z_l.dtype).itemsize)
    if tile_n is None:
        vmem_budget = 12 * 1024 * 1024
        per_row = 2 * (c_in + 3 * c_out) * itemsize      # 2x = double buffering
        tile_n = max(64, min(2048, vmem_budget // max(per_row, 1)))
    tile_n = max(8, (tile_n // 8) * 8)

    if n <= 256:
        # Tiny problem: a single step; extra grid steps would just add overhead.
        tn = n
    else:
        # Keep >= 2 grid steps so the "parallel" axis can shard row tiles across
        # TensorCores (v7x megacore); keep the 8-sublane granule.
        tn = min(tile_n, _round_up(pl.cdiv(n, 2), 8))
    grid = (pl.cdiv(n, tn),)

    row_zo = pl.BlockSpec((tn, c_in), lambda i: (i, 0))
    row_zc = pl.BlockSpec((tn, c_out), lambda i: (i, 0))
    res_u = pl.BlockSpec((1, c_in), lambda i: (0, 0))    # VMEM-resident constants
    res_c = pl.BlockSpec((1, 1), lambda i: (0, 0))
    # TODO(synk): for C_out < 128 the output tile is lane-sparse (masked vst.msk);
    # packing 128//C_out rows per lane-row in the wrapper would make stores lane-dense.

    # Advisory cost: near-zero flops, bandwidth bound (helps XLA overlap neighbors).
    cost = pl.CostEstimate(
        flops=int(n * (4 * c_in + 3 * c_out + 8)),
        transcendentals=int(2 * n),
        bytes_accessed=int(n * (c_in + 3 * c_out) * itemsize + 2 * (c_in + 1) * 4),
    )

    return pl.pallas_call(
        attention2_kernel,
        out_shape=jax.ShapeDtypeStruct((n, c_out), z_l.dtype),
        grid=grid,
        in_specs=[row_zo, row_zc, row_zc, res_u, res_u, res_c, res_c],
        out_specs=row_zc,
        compiler_params=pltpu.CompilerParams(
            dimension_semantics=("parallel",),
            vmem_limit_bytes=32 * 1024 * 1024,
        ),
        cost_estimate=cost,
    )(z_o, z_l, z_g, u_l, u_g, c_l, c_g)


def attention2_ref(z_o, z_l, z_g, w, b):
    """Pure-JAX reference mirroring the PyTorch forward (N x N formulation)."""
    zo_t = z_o @ w.T + b
    att_l = jnp.sum(zo_t @ z_l.T, axis=1)
    att_g = jnp.sum(zo_t @ z_g.T, axis=1)
    att = jax.nn.softmax(jnp.stack([att_l, att_g], axis=1), axis=1)
    return z_l * att[:, 0:1] + z_g * att[:, 1:2]


def _make_inputs(key, n, c_in, c_out, dtype=jnp.float32):
    k_zo, k_zl, k_zg, k_w, k_b = jax.random.split(key, 5)
    z_o = jax.random.normal(k_zo, (n, c_in), dtype)
    z_l = jax.random.normal(k_zl, (n, c_out), dtype)
    z_g = jax.random.normal(k_zg, (n, c_out), dtype)
    bound = 1.0 / (c_in ** 0.5)
    w = jax.random.uniform(k_w, (c_out, c_in), jnp.float32, -bound, bound).astype(dtype)
    b = jax.random.uniform(k_b, (c_out,), jnp.float32, -bound, bound).astype(dtype)
    return z_o, z_l, z_g, w, b


if __name__ == "__main__":
    key = jax.random.PRNGKey(0)
    k1, k2 = jax.random.split(key)

    # Test 1: small shapes (N=8, C_in=16, C_out=32), single-step grid.
    args1 = _make_inputs(k1, 8, 16, 32)
    out1 = jax.block_until_ready(attention2(*args1))
    ref1 = attention2_ref(*args1)
    assert out1.shape == ref1.shape
    assert jnp.allclose(out1, ref1, atol=1e-3, rtol=1e-3), "mismatch vs reference (small)"

    # Test 2: multi-step grid with a partial last tile (N=520, tile_n=128 -> 5 steps).
    # Looser tolerance: the colsum/W-fold changes f32 summation order vs the N x N
    # reference formulation, which drifts with N.
    args2 = _make_inputs(k2, 520, 64, 128)
    out2 = jax.block_until_ready(attention2(*args2, tile_n=128))
    ref2 = attention2_ref(*args2)
    assert out2.shape == ref2.shape
    assert jnp.allclose(out2, ref2, atol=5e-3, rtol=5e-3), "mismatch vs reference (tiled)"

    print("KERNEL_OK")
</pallas_src>

<mosaic_0001>
module attributes {stable_mosaic.version = 11 : i64} {
  func.func @attention2_kernel(%arg0: i32, %arg1: memref<8x16xf32, #tpu.memory_space<vmem>>, %arg2: memref<8x32xf32, #tpu.memory_space<vmem>>, %arg3: memref<8x32xf32, #tpu.memory_space<vmem>>, %arg4: memref<1x16xf32, #tpu.memory_space<vmem>>, %arg5: memref<1x16xf32, #tpu.memory_space<vmem>>, %arg6: memref<1x1xf32, #tpu.memory_space<vmem>>, %arg7: memref<1x1xf32, #tpu.memory_space<vmem>>, %arg8: memref<8x32xf32, #tpu.memory_space<vmem>>) attributes {dimension_semantics = [#tpu.dimension_semantics<parallel>], iteration_bounds = array<i64: 1>, scalar_prefetch = 0 : i64, scratch_operands = 0 : i64, tpu.core_type = #tpu.core_type<tc>, window_params = [{transform_indices = @transform_0, window_bounds = array<i64: 8, 16>}, {transform_indices = @transform_1, window_bounds = array<i64: 8, 32>}, {transform_indices = @transform_2, window_bounds = array<i64: 8, 32>}, {pipeline_mode = #tpu.pipeline_mode<synchronous>, transform_indices = @transform_3, window_bounds = array<i64: 1, 16>}, {pipeline_mode = #tpu.pipeline_mode<synchronous>, transform_indices = @transform_4, window_bounds = array<i64: 1, 16>}, {pipeline_mode = #tpu.pipeline_mode<synchronous>, transform_indices = @transform_5, window_bounds = array<i64: 1, 1>}, {pipeline_mode = #tpu.pipeline_mode<synchronous>, transform_indices = @transform_6, window_bounds = array<i64: 1, 1>}, {transform_indices = @transform_7, window_bounds = array<i64: 8, 32>}]} {
    %c0 = arith.constant 0 : index
    %c0_0 = arith.constant 0 : index
    %0 = vector.load %arg1[%c0, %c0_0] : memref<8x16xf32, #tpu.memory_space<vmem>>, vector<8x16xf32>
    %c0_1 = arith.constant 0 : index
    %c0_2 = arith.constant 0 : index
    %1 = vector.load %arg4[%c0_1, %c0_2] : memref<1x16xf32, #tpu.memory_space<vmem>>, vector<1x16xf32>
    %c0_3 = arith.constant 0 : index
    %c0_4 = arith.constant 0 : index
    %2 = vector.load %arg5[%c0_3, %c0_4] : memref<1x16xf32, #tpu.memory_space<vmem>>, vector<1x16xf32>
    %c0_5 = arith.constant 0 : index
    %c0_6 = arith.constant 0 : index
    %3 = vector.load %arg6[%c0_5, %c0_6] : memref<1x1xf32, #tpu.memory_space<vmem>>, vector<1x1xf32>
    %c0_7 = arith.constant 0 : index
    %c0_8 = arith.constant 0 : index
    %4 = vector.load %arg7[%c0_7, %c0_8] : memref<1x1xf32, #tpu.memory_space<vmem>>, vector<1x1xf32>
    %5 = vector.broadcast %1 : vector<1x16xf32> to vector<8x16xf32>
    %6 = arith.mulf %0, %5 : vector<8x16xf32>
    %cst = arith.constant dense<0.000000e+00> : vector<8xf32>
    %7 = vector.multi_reduction <add>, %6, %cst [1] : vector<8x16xf32> to vector<8xf32>
    %8 = vector.shape_cast %7 : vector<8xf32> to vector<8x1xf32>
    %9 = vector.broadcast %3 : vector<1x1xf32> to vector<8x1xf32>
    %10 = arith.addf %8, %9 : vector<8x1xf32>
    %11 = vector.broadcast %2 : vector<1x16xf32> to vector<8x16xf32>
    %12 = arith.mulf %0, %11 : vector<8x16xf32>
    %cst_9 = arith.constant dense<0.000000e+00> : vector<8xf32>
    %13 = vector.multi_reduction <add>, %12, %cst_9 [1] : vector<8x16xf32> to vector<8xf32>
    %14 = vector.shape_cast %13 : vector<8xf32> to vector<8x1xf32>
    %15 = vector.broadcast %4 : vector<1x1xf32> to vector<8x1xf32>
    %16 = arith.addf %14, %15 : vector<8x1xf32>
    %17 = arith.maximumf %10, %16 : vector<8x1xf32>
    %18 = arith.subf %10, %17 : vector<8x1xf32>
    %19 = math.exp %18 : vector<8x1xf32>
    %20 = arith.subf %16, %17 : vector<8x1xf32>
    %21 = math.exp %20 : vector<8x1xf32>
    %22 = arith.addf %19, %21 : vector<8x1xf32>
    %23 = arith.divf %19, %22 : vector<8x1xf32>
    %24 = arith.divf %21, %22 : vector<8x1xf32>
    %c0_10 = arith.constant 0 : index
    %c0_11 = arith.constant 0 : index
    %25 = vector.load %arg2[%c0_10, %c0_11] : memref<8x32xf32, #tpu.memory_space<vmem>>, vector<8x32xf32>
    %c0_12 = arith.constant 0 : index
    %c0_13 = arith.constant 0 : index
    %26 = vector.load %arg3[%c0_12, %c0_13] : memref<8x32xf32, #tpu.memory_space<vmem>>, vector<8x32xf32>
    %27 = vector.broadcast %23 : vector<8x1xf32> to vector<8x32xf32>
    %28 = arith.mulf %25, %27 : vector<8x32xf32>
    %29 = vector.broadcast %24 : vector<8x1xf32> to vector<8x32xf32>
    %30 = arith.mulf %26, %29 : vector<8x32xf32>
    %31 = arith.addf %28, %30 : vector<8x32xf32>
    %c0_14 = arith.constant 0 : index
    %c0_15 = arith.constant 0 : index
    %32 = vector.load %arg8[%c0_14, %c0_15] : memref<8x32xf32, #tpu.memory_space<vmem>>, vector<8x32xf32>
    tpu.vector_store %arg8[%c0_14, %c0_15], %31 {strides = array<i32>} : memref<8x32xf32, #tpu.memory_space<vmem>>, vector<8x32xf32>,
    return
  }
  func.func @transform_0(%arg0: i32) -> (i32, i32) {
    %c0_i32 = arith.constant 0 : i32
    %c0_i32_0 = arith.constant 0 : i32
    return %arg0, %c0_i32 : i32, i32
  }
  func.func @transform_1(%arg0: i32) -> (i32, i32) {
    %c0_i32 = arith.constant 0 : i32
    %c0_i32_0 = arith.constant 0 : i32
    return %arg0, %c0_i32 : i32, i32
  }
  func.func @transform_2(%arg0: i32) -> (i32, i32) {
    %c0_i32 = arith.constant 0 : i32
    %c0_i32_0 = arith.constant 0 : i32
    return %arg0, %c0_i32 : i32, i32
  }
  func.func @transform_3(%arg0: i32) -> (i32, i32) {
    %c0_i32 = arith.constant 0 : i32
    %c0_i32_0 = arith.constant 0 : i32
    %c0_i32_1 = arith.constant 0 : i32
    return %c0_i32, %c0_i32_0 : i32, i32
  }
  func.func @transform_4(%arg0: i32) -> (i32, i32) {
    %c0_i32 = arith.constant 0 : i32
    %c0_i32_0 = arith.constant 0 : i32
    %c0_i32_1 = arith.constant 0 : i32
    return %c0_i32, %c0_i32_0 : i32, i32
  }
  func.func @transform_5(%arg0: i32) -> (i32, i32) {
    %c0_i32 = arith.constant 0 : i32
    %c0_i32_0 = arith.constant 0 : i32
    %c0_i32_1 = arith.constant 0 : i32
    return %c0_i32, %c0_i32_0 : i32, i32
  }
  func.func @transform_6(%arg0: i32) -> (i32, i32) {
    %c0_i32 = arith.constant 0 : i32
    %c0_i32_0 = arith.constant 0 : i32
    %c0_i32_1 = arith.constant 0 : i32
    return %c0_i32, %c0_i32_0 : i32, i32
  }
  func.func @transform_7(%arg0: i32) -> (i32, i32) {
    %c0_i32 = arith.constant 0 : i32
    %c0_i32_0 = arith.constant 0 : i32
    return %arg0, %c0_i32 : i32, i32
  }
}

</mosaic_0001>

<bundles_post_ra>
// kernel: tpu_custom_call.1
= control target key start
LH: loop header
LB: loop body
LE: loop exit
PB: predicated region body
PF: predicated region fallthrough
CT: control target
= control target key end

     0   :  { %s322_s0 = inlined_call_operand.hbm [shape: f32[8,16], index: 0, kind: input, shape index: {}]   ;;  %s323_s1 = inlined_call_operand.vmem [shape: f32[8,32], index: 1, kind: input, shape index: {}]   ;;  %s324_s2 = inlined_call_operand.hbm [shape: f32[8,32], index: 2, kind: input, shape index: {}]   ;;  %s325_s3 = inlined_call_operand.vmem [shape: f32[1,16], index: 3, kind: input, shape index: {}]   ;;  %s326_s4 = inlined_call_operand.vmem [shape: f32[1,16], index: 4, kind: input, shape index: {}]   ;;  %s327_s5 = inlined_call_operand.<no memory space> [shape: f32[1,1], index: 5, kind: input, shape index: {}]   ;;  %s328_s7 = inlined_call_operand.hbm [shape: f32[8,32], index: 7, kind: output, shape index: {}]   ;;  %s329_s6 = inlined_call_operand.<no memory space> [shape: f32[1,1], index: 6, kind: input, shape index: {}]  }
   0x1   :  { %v12_v0 = vstv %s327_s5  ;;  %v14_v1 = vstv %s329_s6 }
   0x2   :  { %13 = vst [vmem:[#allocation2] sm:$0x1] %v12_v0  ;;  %15 = vst [vmem:[#allocation3] sm:$0x1] %v14_v1 }
   0x3   :  { %16 = vsyncpa [#allocation5], 0 }
   0x4   :  { %17 = vsyncpa [#allocation8], 0 }
   0x5   :  { %18 = vsyncpa [#allocation6], 0  ;;  %s227_s28 = smov [#allocation4]   ;;  %s228_s30 = smov [#allocation7]  }
   0x6   :  { %s25_s29 = sshll.u32 %s227_s28, 4  ;;  %s37_s8 = sshll.u32 %s228_s30, 4  ;;  %s26_s29 = int_to_ptr.vmem [resolvable:$true] %s25_s29  ;;  %s38_s8 = int_to_ptr.vmem [resolvable:$true] %s37_s8 }
   0x7   :  { %s155_s11 = scalar_lea.hbm %s322_s0, 128 }
   0x8   :  { %p156_p0 = scmp.ne.s32.totalorder %s322_s0, %s155_s11  ;;  %p159_p1 = scmp.lt.u32.totalorder %s155_s11, %s322_s0 }
   0xa   :  { %p161_p2 = pnand %p159_p1, %p156_p0 }
   0xc   :  { %164 = shalt.err (!%p161_p2)
}
   0xd   :  { %s165_s14 = scalar_lea.vmem %s26_s29, 128  ;;  %p170_p4 = scmp.lt.s32.totalorder %s26_s29, %s26_s29 }
   0xe   :  { %p166_p3 = scmp.ne.s32.totalorder %s26_s29, %s165_s14  ;;  %p171_p5 = scmp.lt.s32.totalorder %s165_s14, %s165_s14 }
  0x10   :  { %p172_p6 = por %p171_p5, %p170_p4 }
  0x12   :  { %p173_p7 = pnand %p172_p6, %p166_p3 }
  0x14   :  { %176 = shalt.err (!%p173_p7)
}
  0x15   :  { %28 = dma.hbm_to_vmem [thread:$0]  %s322_s0, 128, %s26_s29, [#allocation5]  }
  0x16   :  { %s177_s19 = scalar_lea.hbm %s324_s2, 128 }
  0x17   :  { %p178_p8 = scmp.ne.s32.totalorder %s324_s2, %s177_s19  ;;  %p181_p9 = scmp.lt.u32.totalorder %s177_s19, %s324_s2 }
  0x19   :  { %p183_p10 = pnand %p181_p9, %p178_p8 }
  0x1b   :  { %186 = shalt.err (!%p183_p10)
}
  0x1c   :  { %s187_s24 = scalar_lea.vmem %s38_s8, 128  ;;  %p192_p12 = scmp.lt.s32.totalorder %s38_s8, %s38_s8 }
  0x1d   :  { %p188_p11 = scmp.ne.s32.totalorder %s38_s8, %s187_s24  ;;  %p193_p13 = scmp.lt.s32.totalorder %s187_s24, %s187_s24 }
  0x1f   :  { %p194_p0 = por %p193_p13, %p192_p12 }
  0x21   :  { %p195_p1 = pnand %p194_p0, %p188_p11 }
  0x23   :  { %198 = shalt.err (!%p195_p1)
}
  0x24   :  { %40 = dma.hbm_to_vmem [thread:$0]  %s324_s2, 128, %s38_s8, [#allocation8]  }
  0x25   :  { %221 = dma.done.wait [#allocation5], 128  }
  0x26   :  { %222 = vsyncadd [#allocation5], 4294967168 }
  0x27   :  { %223 = dma.done.wait [#allocation8], 128  }
  0x28   :  { %224 = vsyncadd [#allocation8], 4294967168  ;;  %v55_v2 = vld [vmem:[#allocation4] sm:$0xff]  ;;  %v139_v3 = vld [vmem:[%s325_s3] ss:$0 sm:$0xff]  ;;  %vm67_vm0 = vcmask 130048  }
  0x29   :  { %v141_v4 = vld [vmem:[%s326_s4] ss:$0 sm:$0xff]  ;;  %v66_v5 = vmul.f32 %v139_v3, %v55_v2  ;;  %v229_v9 = vmov 0   ;;  %v142_v12 = vld [vmem:[#allocation3] ss:$0 sm:$0xff]  ;;  %v107_v29 = vld [vmem:[#allocation7] sm:$0xff] }
  0x2a   :  { %v84_v6 = vmul.f32 %v141_v4, %v55_v2  ;;  %147 = vset.pattern.permute.xlu1 %v229_v9  ;;  %148 = vset.pattern.permute.xlu0 %v229_v9  ;;  %v140_v11 = vld [vmem:[#allocation2] ss:$0 sm:$0xff]  ;;  %s230_s4 = smov [#allocation9]   ;;  %vm121_vm1 = vcmask 261120  }
  0x2b   :  { %v68_v7 = vsel %vm67_vm0, %v66_v5, 0.0  ;;  %v106_v28 = vld [vmem:[%s323_s1] sm:$0xff]  ;;  %s129_s30 = sshll.u32 %s230_s4, 4  ;;  %s130_s30 = int_to_ptr.vmem [resolvable:$true] %s129_s30 }
  0x2c   :  { %69 = vadd.xlane.f32.xlu0 %v68_v7  ;;  %v85_v8 = vsel %vm67_vm0, %v84_v6, 0.0  ;;  %s199_s8 = scalar_lea.vmem %s130_s30, 128  ;;  %p204_p3 = scmp.lt.s32.totalorder %s130_s30, %s130_s30 }
  0x2d   :  { %p200_p2 = scmp.ne.s32.totalorder %s130_s30, %s199_s8  ;;  %p205_p4 = scmp.lt.s32.totalorder %s199_s8, %s199_s8 }
  0x2f   :  { %p206_p5 = por %p205_p4, %p204_p3 }
  0x30   :  { %86 = vadd.xlane.f32.xlu0 %v85_v8 }
  0x31   :  { %p207_p6 = pnand %p206_p5, %p200_p2 }
  0xb9   :  { %v70_v10 = vpop.xlane.xlu0 %69 }
  0xba   :  { %v77_v14 = vadd.f32 %v140_v11, %v70_v10 }
  0xbd   :  { %v87_v13 = vpop.xlane.xlu0 %86 }
  0xbe   :  { %v94_v15 = vadd.f32 %v142_v12, %v87_v13 }
  0xc0   :  { %v95_v16 = vmax.f32 %v77_v14, %v94_v15 }
  0xc2   :  { %v96_v17 = vsub.f32 %v77_v14, %v95_v16  ;;  %v99_v18 = vsub.f32 %v94_v15, %v95_v16 }
  0xc4   :  { %v97_v19 = vmul.f32 1.442695, %v96_v17  ;;  %v100_v20 = vmul.f32 1.442695, %v99_v18 }
  0xc6   :  { %149 = vpow2.f32 %v97_v19 }
  0xc7   :  { %151 = vpow2.f32 %v100_v20 }
  0xd0   :  { %v150_v21 = vpop.eup %149 }
  0xd1   :  { %v152_v22 = vpop.eup %151 }
  0xd2   :  { %v102_v23 = vadd.f32 %v152_v22, %v150_v21 }
  0xd4   :  { %153 = vrcp.f32 %v102_v23 }
  0xde   :  { %v154_v24 = vpop.eup %153 }
  0xdf   :  { %v104_v25 = vmul.f32 %v154_v24, %v150_v21  ;;  %v105_v26 = vmul.f32 %v154_v24, %v152_v22 }
  0xe1   :  { %110 = vperm.xlu1 %147, %v104_v25  }
  0xe5   :  { %116 = vperm.xlu1 %147, %v105_v26  }
 0x160   :  { %v111_v27 = vpop.permute.xlu1 %110 }
 0x161   :  { %v113_v31 = vmul.f32 %v111_v27, %v106_v28 }
 0x164   :  { %v117_v30 = vpop.permute.xlu1 %116 }
 0x165   :  { %v119_v32 = vmul.f32 %v117_v30, %v107_v29 }
 0x167   :  { %v120_v33 = vadd.f32 %v119_v32, %v113_v31 }
 0x169   :  { %122 = vst.msk [vmem:[#allocation9] sm:$0xff] %vm121_vm1, %v120_v33 }
 0x16a   :  { %210 = shalt.err (!%p207_p6)
}
 0x16b   :  { %s211_s1 = scalar_lea.hbm %s328_s7, 128 }
 0x16c   :  { %p212_p7 = scmp.ne.s32.totalorder %s328_s7, %s211_s1  ;;  %p215_p8 = scmp.lt.u32.totalorder %s211_s1, %s328_s7 }
 0x16e   :  { %p217_p9 = pnand %p215_p8, %p212_p7 }
 0x170   :  { %220 = shalt.err (!%p217_p9)
}
 0x171   :  { %132 = dma.vmem_to_hbm [thread:$0]  %s130_s30, 128, %s328_s7, [#allocation6]  }
 0x172   :  { %225 = dma.done.wait [#allocation6], 128  }
 0x173   :  { %226 = vsyncadd [#allocation6], 4294967168 }
 0x174   :  { %136 = vsyncpa [#allocation5], 1 }
 0x175   :  { %137 = vsyncpa [#allocation8], 1 }
 0x176   :  { %138 = vsyncpa [#allocation6], 1 }

</bundles_post_ra>
